<compile_context>
chip_gen: v6e
topology: v6e:2x2x1
jax: 0.10.0
libtpu: 0.0.40
codegen_flags: <defaults>
</compile_context>

<pallas_src>
import jax
import jax.numpy as jnp
from jax.experimental import pallas as pl
from jax.experimental.pallas import tpu as pltpu

DEFAULT_EPS = 1e-6


def _round_up(x, m):
    return ((x + m - 1) // m) * m


def _make_kernel(feat, eps):
    inv_n = 1.0 / float(feat)
    # Bessel correction (ddof=1) like torch.std.  F == 1 is guarded: torch
    # would give NaN there; this kernel returns beta instead.
    inv_nm1 = 1.0 / float(max(feat - 1, 1))

    def kernel(x_ref, gamma_ref, beta_ref, o_ref):
        # x_ref: (row_tile, feat); gamma/beta: (1, feat)
        x = x_ref[...].astype(jnp.float32)
        mean = jnp.sum(x, axis=-1, keepdims=True) * inv_n
        diff = x - mean
        var = jnp.sum(diff * diff, axis=-1, keepdims=True) * inv_nm1
        std = jnp.sqrt(var)
        # approx=False lowers to an exact divide (not the EUP vrcp); it acts
        # on a (row_tile, 1) column so the cost is negligible either way and
        # it keeps the 1e-5 accuracy of the reference.
        inv = pl.reciprocal(std + eps, approx=False)
        gamma = gamma_ref[...].astype(jnp.float32)
        beta = beta_ref[...].astype(jnp.float32)
        o_ref[...] = ((diff * inv) * gamma + beta).astype(o_ref.dtype)

    return kernel


def _pick_row_tile(rows, feat, itemsize):
    # Sub-32-bit dtypes pack along sublanes -> bigger row granule.
    sublane = 8 if itemsize >= 4 else (16 if itemsize == 2 else 32)

    # Live VMEM per grid step:
    #   double-buffered input + output tiles : 2*2 * rt*feat*itemsize
    #   ~4 full-tile f32 temps in the body   :   4 * rt*feat*4
    # A 16 MiB budget lands input blocks at ~1-2 MiB, which is already ~85%
    # of HBM roofline; larger tiles only add VMEM / spill risk (esp. on
    # v7x's 64 MiB VMEM) for no measurable bandwidth gain.
    budget = 16 << 20
    bytes_per_row = feat * (4 * itemsize + 16)
    rt = max(sublane, budget // max(bytes_per_row, 1))
    rt = max(sublane, (rt // sublane) * sublane)

    rows_ceil = _round_up(rows, sublane)
    rt = min(rt, rows_ceil)

    # Prefer an even number of grid steps when there is more than one, so the
    # ("parallel",) row axis splits evenly across v7x's 2 TensorCores.  On
    # 1-TC chips (v5e/v6e) this is harmless (same or slightly smaller tiles).
    steps = pl.cdiv(rows, rt)
    if steps > 1 and steps % 2 == 1:
        rt_even = _round_up(pl.cdiv(rows, steps + 1), sublane)
        if rt_even >= sublane:
            rt = rt_even
    return int(rt)


def layer_norm(x, gamma, beta, eps=DEFAULT_EPS):
    """x: (..., F); gamma, beta: (F,). Normalizes over the last axis."""
    orig_shape = x.shape
    feat = orig_shape[-1]
    x2d = x.reshape(-1, feat)
    rows = x2d.shape[0]
    itemsize = jnp.dtype(x.dtype).itemsize

    row_tile = _pick_row_tile(rows, feat, itemsize)
    grid = (pl.cdiv(rows, row_tile),)   # boundary block stores are masked

    gamma2d = gamma.reshape(1, feat)
    beta2d = beta.reshape(1, feat)

    # VMEM bound sized to the chosen tiles (double-buffered x/out, resident
    # gamma/beta, ~4 full-tile f32 temps) with 1.5x headroom; capped at
    # 40 MiB, well under v7x's 64 MiB physical VMEM.
    block_bytes = row_tile * feat * itemsize
    live = 2 * 2 * block_bytes + 2 * 2 * feat * itemsize + 4 * row_tile * feat * 4
    vmem_limit = int(min(40 << 20, max(8 << 20, int(1.5 * live))))

    # Advisory cost so XLA overlaps this full-HBM-pass custom call sensibly.
    cost = pl.CostEstimate(
        flops=int(6 * rows * feat),
        transcendentals=int(2 * rows),
        bytes_accessed=int((2 * rows * feat + 2 * feat) * itemsize),
    )

    out = pl.pallas_call(
        _make_kernel(feat, eps),
        out_shape=jax.ShapeDtypeStruct((rows, feat), x.dtype),
        grid_spec=pltpu.PrefetchScalarGridSpec(
            num_scalar_prefetch=0,
            grid=grid,
            in_specs=[
                pl.BlockSpec((row_tile, feat), lambda i: (i, 0)),
                pl.BlockSpec((1, feat), lambda i: (0, 0)),
                pl.BlockSpec((1, feat), lambda i: (0, 0)),
            ],
            out_specs=pl.BlockSpec((row_tile, feat), lambda i: (i, 0)),
        ),
        compiler_params=pltpu.CompilerParams(
            dimension_semantics=("parallel",),
            vmem_limit_bytes=vmem_limit,
        ),
        cost_estimate=cost,
    )(x2d, gamma2d, beta2d)

    return out.reshape(orig_shape)


if __name__ == "__main__":
    # Small shapes consistent with the module: batch=2, seq=8, features=32.
    B, S, F = 2, 8, 32
    key = jax.random.PRNGKey(0)
    x = jax.random.normal(key, (B, S, F), dtype=jnp.float32)

    # nn.Parameter(torch.ones(features)) / torch.zeros(features)
    gamma = jnp.ones((F,), dtype=jnp.float32)
    beta = jnp.zeros((F,), dtype=jnp.float32)

    y = layer_norm(x, gamma, beta)
    jax.block_until_ready(y)

    # Reference in plain JAX (unbiased std, eps added to std).
    mean = jnp.mean(x, axis=-1, keepdims=True)
    std = jnp.sqrt(jnp.sum((x - mean) ** 2, axis=-1, keepdims=True) / (F - 1))
    ref = gamma * (x - mean) / (std + DEFAULT_EPS) + beta
    assert jnp.allclose(y, ref, atol=1e-5, rtol=1e-5), "mismatch vs reference"

    print("KERNEL_OK")
</pallas_src>

<mosaic_0001>
module attributes {stable_mosaic.version = 11 : i64} {
  func.func @kernel(%arg0: i32, %arg1: memref<16x32xf32, #tpu.memory_space<vmem>>, %arg2: memref<1x32xf32, #tpu.memory_space<vmem>>, %arg3: memref<1x32xf32, #tpu.memory_space<vmem>>, %arg4: memref<16x32xf32, #tpu.memory_space<vmem>>) attributes {dimension_semantics = [#tpu.dimension_semantics<parallel>], iteration_bounds = array<i64: 1>, scalar_prefetch = 0 : i64, scratch_operands = 0 : i64, tpu.core_type = #tpu.core_type<tc>, window_params = [{transform_indices = @transform_0, window_bounds = array<i64: 16, 32>}, {pipeline_mode = #tpu.pipeline_mode<synchronous>, transform_indices = @transform_1, window_bounds = array<i64: 1, 32>}, {pipeline_mode = #tpu.pipeline_mode<synchronous>, transform_indices = @transform_2, window_bounds = array<i64: 1, 32>}, {transform_indices = @transform_3, window_bounds = array<i64: 16, 32>}]} {
    %c0 = arith.constant 0 : index
    %c0_0 = arith.constant 0 : index
    %0 = vector.load %arg1[%c0, %c0_0] : memref<16x32xf32, #tpu.memory_space<vmem>>, vector<16x32xf32>
    %cst = arith.constant dense<0.000000e+00> : vector<16xf32>
    %1 = vector.multi_reduction <add>, %0, %cst [1] : vector<16x32xf32> to vector<16xf32>
    %2 = vector.shape_cast %1 : vector<16xf32> to vector<16x1xf32>
    %cst_1 = arith.constant 3.125000e-02 : f32
    %3 = vector.broadcast %cst_1 : f32 to vector<16x1xf32>
    %4 = arith.mulf %2, %3 : vector<16x1xf32>
    %5 = vector.broadcast %4 : vector<16x1xf32> to vector<16x32xf32>
    %6 = arith.subf %0, %5 : vector<16x32xf32>
    %7 = arith.mulf %6, %6 : vector<16x32xf32>
    %cst_2 = arith.constant dense<0.000000e+00> : vector<16xf32>
    %8 = vector.multi_reduction <add>, %7, %cst_2 [1] : vector<16x32xf32> to vector<16xf32>
    %9 = vector.shape_cast %8 : vector<16xf32> to vector<16x1xf32>
    %cst_3 = arith.constant 0.0322580636 : f32
    %10 = vector.broadcast %cst_3 : f32 to vector<16x1xf32>
    %11 = arith.mulf %9, %10 : vector<16x1xf32>
    %12 = math.sqrt %11 : vector<16x1xf32>
    %cst_4 = arith.constant 9.99999997E-7 : f32
    %13 = vector.broadcast %cst_4 : f32 to vector<16x1xf32>
    %14 = arith.addf %12, %13 : vector<16x1xf32>
    %15 = tpu.reciprocal %14 : vector<16x1xf32> -> vector<16x1xf32>
    %c0_5 = arith.constant 0 : index
    %c0_6 = arith.constant 0 : index
    %16 = vector.load %arg2[%c0_5, %c0_6] : memref<1x32xf32, #tpu.memory_space<vmem>>, vector<1x32xf32>
    %c0_7 = arith.constant 0 : index
    %c0_8 = arith.constant 0 : index
    %17 = vector.load %arg3[%c0_7, %c0_8] : memref<1x32xf32, #tpu.memory_space<vmem>>, vector<1x32xf32>
    %18 = vector.broadcast %15 : vector<16x1xf32> to vector<16x32xf32>
    %19 = arith.mulf %6, %18 : vector<16x32xf32>
    %20 = vector.broadcast %16 : vector<1x32xf32> to vector<16x32xf32>
    %21 = arith.mulf %19, %20 : vector<16x32xf32>
    %22 = vector.broadcast %17 : vector<1x32xf32> to vector<16x32xf32>
    %23 = arith.addf %21, %22 : vector<16x32xf32>
    %c0_9 = arith.constant 0 : index
    %c0_10 = arith.constant 0 : index
    %24 = vector.load %arg4[%c0_9, %c0_10] : memref<16x32xf32, #tpu.memory_space<vmem>>, vector<16x32xf32>
    tpu.vector_store %arg4[%c0_9, %c0_10], %23 {strides = array<i32>} : memref<16x32xf32, #tpu.memory_space<vmem>>, vector<16x32xf32>,
    return
  }
  func.func @transform_0(%arg0: i32) -> (i32, i32) {
    %c0_i32 = arith.constant 0 : i32
    %c0_i32_0 = arith.constant 0 : i32
    return %arg0, %c0_i32 : i32, i32
  }
  func.func @transform_1(%arg0: i32) -> (i32, i32) {
    %c0_i32 = arith.constant 0 : i32
    %c0_i32_0 = arith.constant 0 : i32
    %c0_i32_1 = arith.constant 0 : i32
    return %c0_i32, %c0_i32_0 : i32, i32
  }
  func.func @transform_2(%arg0: i32) -> (i32, i32) {
    %c0_i32 = arith.constant 0 : i32
    %c0_i32_0 = arith.constant 0 : i32
    %c0_i32_1 = arith.constant 0 : i32
    return %c0_i32, %c0_i32_0 : i32, i32
  }
  func.func @transform_3(%arg0: i32) -> (i32, i32) {
    %c0_i32 = arith.constant 0 : i32
    %c0_i32_0 = arith.constant 0 : i32
    return %arg0, %c0_i32 : i32, i32
  }
}

</mosaic_0001>

<bundles_post_ra>
// kernel: tpu_custom_call.1
= control target key start
LH: loop header
LB: loop body
LE: loop exit
PB: predicated region body
PF: predicated region fallthrough
CT: control target
= control target key end

     0   :  { %8 = vsyncpa [#allocation3], 0  ;;  %s215_s0 = inlined_call_operand.hbm [shape: f32[16,32], index: 0, kind: input, shape index: {}]   ;;  %s216_s1 = inlined_call_operand.vmem [shape: f32[1,32], index: 1, kind: input, shape index: {}]   ;;  %s217_s2 = inlined_call_operand.vmem [shape: f32[1,32], index: 2, kind: input, shape index: {}]   ;;  %s218_s3 = inlined_call_operand.hbm [shape: f32[16,32], index: 3, kind: output, shape index: {}]  }
   0x1   :  { %9 = vsyncpa [#allocation4], 0  ;;  %s167_s12 = smov [#allocation2]  }
   0x2   :  { %s15_s13 = sshll.u32 %s167_s12, 4  ;;  %s16_s13 = int_to_ptr.vmem [resolvable:$true] %s15_s13 }
   0x3   :  { %s131_s14 = scalar_lea.vmem %s16_s13, 256  ;;  %p136_p1 = scmp.lt.s32.totalorder %s16_s13, %s16_s13 }
   0x4   :  { %p132_p0 = scmp.ne.s32.totalorder %s16_s13, %s131_s14  ;;  %p137_p2 = scmp.lt.s32.totalorder %s131_s14, %s131_s14 }
   0x6   :  { %p138_p3 = por %p137_p2, %p136_p1 }
   0x8   :  { %p139_p4 = pnand %p138_p3, %p132_p0 }
   0xa   :  { %142 = shalt.err (!%p139_p4)
}
   0xb   :  { %s168_s15 = smov 128   ;;  %s169_s16 = smov 8  }
   0xc   :  { %21 = dma.hbm_to_vmem [thread:$0]  %s215_s0, 256, %s16_s13, [#allocation3], %s168_s15, %s168_s15, %s169_s16  }
   0xd   :  { %163 = dma.done.wait [#allocation3], 256  }
   0xe   :  { %164 = vsyncadd [#allocation3], 4294967040  ;;  %vm31_vm0 = vcmask 261120   ;;  %v29_v0 = vld [vmem:[#allocation2] sm:$0xff]  ;;  %v30_v1 = vld [vmem:[#allocation2 + $0x8] sm:$0xff]  ;;  %s170_s22 = smov [#allocation5]  }
   0xf   :  { %v32_v2 = vsel %vm31_vm0, %v29_v0, 0.0  ;;  %v35_v3 = vsel %vm31_vm0, %v30_v1, 0.0  ;;  %v109_v31 = vld [vmem:[%s216_s1] ss:$0 sm:$0xff]  ;;  %s97_s23 = sshll.u32 %s170_s22, 4  ;;  %s98_s23 = int_to_ptr.vmem [resolvable:$true] %s97_s23 }
  0x10   :  { %33 = vadd.xlane.f32.xlu0 %v32_v2  ;;  %v110_v33 = vld [vmem:[%s217_s2] ss:$0 sm:$0xff]  ;;  %s143_s24 = scalar_lea.vmem %s98_s23, 256  ;;  %p148_p6 = scmp.lt.s32.totalorder %s98_s23, %s98_s23 }
  0x11   :  { %p144_p5 = scmp.ne.s32.totalorder %s98_s23, %s143_s24  ;;  %p149_p7 = scmp.lt.s32.totalorder %s143_s24, %s143_s24 }
  0x13   :  { %p150_p8 = por %p149_p7, %p148_p6 }
  0x14   :  { %36 = vadd.xlane.f32.xlu0 %v35_v3 }
  0x15   :  { %p151_p9 = pnand %p150_p8, %p144_p5 }
  0x99   :  { %v34_v4 = vpop.xlane.xlu0 %33 }
  0x9a   :  { %v38_v5 = vmul.f32 0.03125, %v34_v4 }
  0x9c   :  { %v40_v6 = vsub.f32 %v29_v0, %v38_v5 }
  0x9d   :  { %v37_v7 = vpop.xlane.xlu0 %36 }
  0x9e   :  { %v39_v8 = vmul.f32 0.03125, %v37_v7  ;;  %v42_v9 = vmul.f32 %v40_v6, %v40_v6 }
  0xa0   :  { %v41_v10 = vsub.f32 %v30_v1, %v39_v8  ;;  %v44_v11 = vsel %vm31_vm0, %v42_v9, 0.0 }
  0xa1   :  { %45 = vadd.xlane.f32.xlu1 %v44_v11 }
  0xa2   :  { %v43_v12 = vmul.f32 %v41_v10, %v41_v10 }
  0xa4   :  { %v47_v13 = vsel %vm31_vm0, %v43_v12, 0.0 }
  0xa5   :  { %48 = vadd.xlane.f32.xlu1 %v47_v13 }
 0x12a   :  { %v46_v14 = vpop.xlane.xlu1 %45 }
 0x12b   :  { %v50_v15 = vmul.f32 0.032258064, %v46_v14 }
 0x12d   :  { %115 = vrsqrt.f32 %v50_v15  ;;  %vm54_vm1 = vcmp.eq.f32.partialorder %v50_v15, inf  ;;  %v57_v20 = vand.u32 2147483648, %v50_v15  ;;  %vm56_vm2 = vcmp.eq.f32.partialorder %v50_v15, 0.0 }
 0x12e   :  { %v49_v16 = vpop.xlane.xlu1 %48 }
 0x12f   :  { %v51_v17 = vmul.f32 0.032258064, %v49_v16 }
 0x131   :  { %117 = vrsqrt.f32 %v51_v17  ;;  %vm61_vm3 = vcmp.eq.f32.partialorder %v51_v17, inf  ;;  %v64_v26 = vand.u32 2147483648, %v51_v17  ;;  %vm63_vm4 = vcmp.eq.f32.partialorder %v51_v17, 0.0 }
 0x13a   :  { %v116_v18 = vpop.eup %115 }
 0x13b   :  { %v53_v19 = vmul.f32 %v116_v18, %v50_v15 }
 0x13d   :  { %v55_v21 = vsel %vm54_vm1, %v50_v15, %v53_v19 }
 0x13e   :  { %v118_v22 = vpop.eup %117  ;;  %v58_v23 = vsel %vm56_vm2, %v57_v20, %v55_v21 }
 0x13f   :  { %v66_v24 = vadd.f32 1e-06, %v58_v23  ;;  %v60_v25 = vmul.f32 %v118_v22, %v51_v17 }
 0x141   :  { %119 = vrcp.f32 %v66_v24  ;;  %v62_v27 = vsel %vm61_vm3, %v51_v17, %v60_v25 }
 0x142   :  { %v65_v28 = vsel %vm63_vm4, %v64_v26, %v62_v27 }
 0x143   :  { %v67_v29 = vadd.f32 1e-06, %v65_v28 }
 0x145   :  { %121 = vrcp.f32 %v67_v29 }
 0x14e   :  { %v120_v30 = vpop.eup %119 }
 0x14f   :  { %v72_v32 = vmul.f32 %v120_v30, %v40_v6 }
 0x151   :  { %v80_v34 = vmul.f32 %v109_v31, %v72_v32 }
 0x152   :  { %v122_v35 = vpop.eup %121 }
 0x153   :  { %v73_v36 = vmul.f32 %v122_v35, %v41_v10  ;;  %v88_v37 = vadd.f32 %v110_v33, %v80_v34 }
 0x155   :  { %v81_v38 = vmul.f32 %v109_v31, %v73_v36  ;;  %90 = vst.msk [vmem:[#allocation5] sm:$0xff] %vm31_vm0, %v88_v37 }
 0x157   :  { %v89_v39 = vadd.f32 %v110_v33, %v81_v38 }
 0x159   :  { %91 = vst.msk [vmem:[#allocation5 + $0x8] sm:$0xff] %vm31_vm0, %v89_v39 }
 0x15a   :  { %154 = shalt.err (!%p151_p9)
}
 0x15b   :  { %103 = dma.vmem_to_hbm [thread:$0]  %s98_s23, 256, %s218_s3, [#allocation4], %s168_s15, %s168_s15, %s169_s16  }
 0x15c   :  { %165 = dma.done.wait [#allocation4], 256  }
 0x15d   :  { %166 = vsyncadd [#allocation4], 4294967040 }
 0x15e   :  { %107 = vsyncpa [#allocation3], 1 }
 0x15f   :  { %108 = vsyncpa [#allocation4], 1 }

</bundles_post_ra>
